<compile_context>
chip_gen: v7x
topology: tpu7x:2x2x1
jax: 0.10.0
libtpu: 0.0.40
codegen_flags: <defaults>
</compile_context>

<pallas_src>
import jax
import jax.numpy as jnp
from jax.experimental import pallas as pl
from jax.experimental.pallas import tpu as pltpu


def _make_kernel(tk, kp, wb_resident):
    """Build the fused forward kernel for a given K-tile size / Wb residency."""

    def kernel(x_ref, wb_ref, bb_ref, w1_ref, b1_ref, w2_ref, b2_ref,
               o_ref, acc_ref):
        k = pl.program_id(1)

        # ---- backbone first matmul, accumulated over the K (in_dim) axis ----
        @pl.when(k == 0)
        def _():
            # Seed the accumulator with the broadcast backbone bias: removes a
            # full-width (TB, HP) add from the finalize epilogue.
            acc_ref[...] = jnp.broadcast_to(bb_ref[...], acc_ref.shape)

        if wb_resident:
            if tk == kp:
                wb_blk = wb_ref[...]
            else:
                off = pl.multiple_of(k * tk, tk)
                wb_blk = wb_ref[pl.ds(off, tk), :]
        else:
            wb_blk = wb_ref[...]

        acc_ref[...] += jnp.dot(x_ref[...], wb_blk,
                                preferred_element_type=jnp.float32)

        # ---- finalize: rest of the network runs once per batch tile ----
        @pl.when(k == pl.num_programs(1) - 1)
        def _():
            # synthetic backbone ReLU (bias already folded into the accumulator)
            h = jnp.maximum(acc_ref[...], 0.0)

            # contrastive head ('mlp'): Linear -> ReLU -> Linear (lane-dense 128)
            h1 = jnp.dot(h, w1_ref[...], preferred_element_type=jnp.float32)
            h1 = jnp.maximum(h1 + b1_ref[...], 0.0)
            f = jnp.dot(h1, w2_ref[...],
                        preferred_element_type=jnp.float32) + b2_ref[...]

            # F.normalize(features, dim=1), eps=1e-12.  Narrow (TB,1)
            # reciprocal + broadcast multiply instead of a full-width divide.
            ss = jnp.sum(f * f, axis=-1, keepdims=True)
            norm = jnp.sqrt(ss)
            inv_norm = 1.0 / jnp.maximum(norm, 1e-12)
            f = f * inv_norm

            # hyptorch ToPoincare (c=1, train_x=False): project(expmap0(f)).
            # Reuse the reduction above: ||f_normalized|| == norm * inv_norm,
            # so no extra cross-lane reduction.  Lower clip of clamp(u,-15,15)
            # is dead since u >= 1e-5 > -15.
            u = jnp.maximum(norm * inv_norm, 1e-5)              # (TB, 1)
            scale = jnp.tanh(jnp.minimum(u, 15.0)) / u          # (TB, 1)
            gamma = f * scale

            gs = jnp.sum(gamma * gamma, axis=-1, keepdims=True)
            g_norm = jnp.maximum(jnp.sqrt(gs), 1e-5)
            maxnorm = 1.0 - 1e-3
            # Fold the projection select into a narrow per-row scale.
            row_scale = jnp.where(g_norm > maxnorm, maxnorm / g_norm, 1.0)
            o_ref[...] = gamma * row_scale

    return kernel


def _round_up(x, m):
    return (x + m - 1) // m * m


def hyp_contrastive_forward(x_nchw, params, *, tile_batch=512, tile_k=4096,
                            use_bf16=True):
    """x_nchw: (B, C, H, W) float32. Returns (B, features_dim) float32."""
    B = x_nchw.shape[0]
    x_flat = x_nchw.reshape(B, -1)          # row-major, matches torch .view
    in_dim = x_flat.shape[1]

    wb, bb, w1, b1, w2, b2 = (params[k] for k in ("wb", "bb", "w1", "b1", "w2", "b2"))
    backbone_dim = wb.shape[1]
    features_dim = w2.shape[1]

    # ---- TPU-friendly padded shapes (lane = 128) ----
    HP = _round_up(backbone_dim, 128)   # lane-dense hidden width
    FP = _round_up(features_dim, 128)   # lane-dense output width
    KP = _round_up(in_dim, 128)

    x_dtype = jnp.bfloat16 if use_bf16 else jnp.float32
    x_bytes = 2 if use_bf16 else 4

    VMEM_BUDGET = 40 * 1024 * 1024        # tile footprint target
    WB_RESIDENT_BUDGET = 16 * 1024 * 1024 # keep whole Wb in VMEM if <= this
    wb_resident = (2 * KP * HP * x_bytes) <= WB_RESIDENT_BUDGET

    # ---- batch tile: sublane-aligned, and >=2 tiles when batch allows so
    # both v7x TensorCores get work from the "parallel" axis ----
    row_align = 16 if use_bf16 else 8
    BP0 = _round_up(max(B, 1), row_align)
    TB = min(_round_up(tile_batch, row_align), BP0)
    if BP0 >= 2 * row_align:
        TB = min(TB, _round_up((BP0 + 1) // 2, row_align))

    def footprint(tb, tk):
        f = 2 * tb * tk * x_bytes                                   # x (dbl-buffered)
        f += (2 * KP * HP if wb_resident else 2 * tk * HP) * x_bytes  # Wb
        f += 2 * (HP * HP + HP * FP + 2 * HP + FP) * 4              # W1/W2/biases (f32)
        f += 2 * tb * FP * 4                                        # output
        f += tb * HP * 4                                            # f32 accumulator
        return f

    while TB > row_align and footprint(TB, 128) > VMEM_BUDGET:
        TB = max(row_align, _round_up(TB // 2, row_align))

    # ---- K tile: largest 128-multiple divisor of KP that fits tile_k and the
    # VMEM budget (divisor => no extra K padding of x beyond 128 alignment) ----
    units = KP // 128
    tk_cap = max(128, min(_round_up(tile_k, 128), KP))
    tk_cands = sorted((128 * d for d in range(1, units + 1) if units % d == 0),
                      reverse=True)
    TK = 128
    for t in tk_cands:
        if t <= tk_cap and footprint(TB, t) <= VMEM_BUDGET:
            TK = t
            break

    BP = _round_up(max(B, 1), TB)

    # ---- pad / cast (skipped entirely when shapes already align; the bf16
    # cast and pad fuse into a single pass under jit) ----
    def prep(a, rows, cols, dtype):
        a = a.astype(dtype)
        if a.shape != (rows, cols):
            a = jnp.pad(a, ((0, rows - a.shape[0]), (0, cols - a.shape[1])))
        return a

    # Zero padding keeps the math exact: padded hidden columns stay 0 through
    # ReLU, padded K rows contribute 0 to the dot, padded feature columns stay
    # 0 and contribute 0 to the norms.
    x_p = prep(x_flat, BP, KP, x_dtype)
    wb_p = prep(wb, KP, HP, x_dtype)
    bb_p = prep(bb, 1, HP, jnp.float32)
    w1_p = prep(w1, HP, HP, jnp.float32)
    b1_p = prep(b1, 1, HP, jnp.float32)
    w2_p = prep(w2, HP, FP, jnp.float32)
    b2_p = prep(b2, 1, FP, jnp.float32)

    grid = (BP // TB, KP // TK)
    const = lambda i, k: (0, 0)   # weights/biases: one block, VMEM-resident

    if wb_resident:
        wb_spec = pl.BlockSpec((KP, HP), const)            # DMA'd once, sliced in-kernel
    else:
        wb_spec = pl.BlockSpec((TK, HP), lambda i, k: (k, 0))

    kernel = _make_kernel(TK, KP, wb_resident)

    out = pl.pallas_call(
        kernel,
        out_shape=jax.ShapeDtypeStruct((BP, FP), jnp.float32),
        grid=grid,
        in_specs=[
            pl.BlockSpec((TB, TK), lambda i, k: (i, k)),   # x: batch x K tiles
            wb_spec,                                       # Wb
            pl.BlockSpec((1, HP), const),                  # bb
            pl.BlockSpec((HP, HP), const),                 # W1
            pl.BlockSpec((1, HP), const),                  # b1
            pl.BlockSpec((HP, FP), const),                 # W2
            pl.BlockSpec((1, FP), const),                  # b2
        ],
        out_specs=pl.BlockSpec((TB, FP), lambda i, k: (i, 0)),
        scratch_shapes=[pltpu.VMEM((TB, HP), jnp.float32)],   # first-matmul accumulator
        compiler_params=pltpu.CompilerParams(
            dimension_semantics=("parallel", "arbitrary"),
            vmem_limit_bytes=64 * 1024 * 1024),
    )(x_p, wb_p, bb_p, w1_p, b1_p, w2_p, b2_p)

    return out[:B, :features_dim]


def init_params(key, in_dim, backbone_dim, features_dim):
    ks = jax.random.split(key, 6)
    s_b = 1.0 / jnp.sqrt(in_dim)
    s_1 = 1.0 / jnp.sqrt(backbone_dim)
    return {
        # synthetic backbone linear
        "wb": jax.random.uniform(ks[0], (in_dim, backbone_dim), jnp.float32, -s_b, s_b),
        "bb": jax.random.uniform(ks[1], (1, backbone_dim), jnp.float32, -s_b, s_b),
        # mlp head
        "w1": jax.random.uniform(ks[2], (backbone_dim, backbone_dim), jnp.float32, -s_1, s_1),
        "b1": jax.random.uniform(ks[3], (1, backbone_dim), jnp.float32, -s_1, s_1),
        "w2": jax.random.uniform(ks[4], (backbone_dim, features_dim), jnp.float32, -s_1, s_1),
        "b2": jax.random.uniform(ks[5], (1, features_dim), jnp.float32, -s_1, s_1),
    }


def reference_forward(x_nchw, p):
    """Pure-JAX reference of the same math (for sanity checking)."""
    B = x_nchw.shape[0]
    x = x_nchw.reshape(B, -1)
    h = jnp.maximum(x @ p["wb"] + p["bb"], 0.0)
    h1 = jnp.maximum(h @ p["w1"] + p["b1"], 0.0)
    f = h1 @ p["w2"] + p["b2"]
    f = f / jnp.maximum(jnp.linalg.norm(f, axis=1, keepdims=True), 1e-12)
    un = jnp.maximum(jnp.linalg.norm(f, axis=1, keepdims=True), 1e-5)
    g = jnp.tanh(jnp.clip(un, -15.0, 15.0)) * f / un
    gn = jnp.maximum(jnp.linalg.norm(g, axis=1, keepdims=True), 1e-5)
    maxnorm = 1.0 - 1e-3
    return jnp.where(gn > maxnorm, g / gn * maxnorm, g)


if __name__ == "__main__":
    # small shapes consistent with the module: x is an image batch (NCHW),
    # backbone_dim=32, features_dim=128, head='mlp', L2Norm=True, c=1.0
    B, C, H, W = 2, 4, 16, 16
    backbone_dim, features_dim = 32, 128

    key = jax.random.PRNGKey(0)
    kx, kp = jax.random.split(key)
    x = jax.random.normal(kx, (B, C, H, W), dtype=jnp.float32)
    params = init_params(kp, C * H * W, backbone_dim, features_dim)

    ref = reference_forward(x, params)

    # f32 path: tight check against the pure-JAX reference.
    fwd_f32 = jax.jit(lambda xx, pp: hyp_contrastive_forward(xx, pp, use_bf16=False))
    out32 = jax.block_until_ready(fwd_f32(x, params))
    assert out32.shape == (B, features_dim)
    err32 = jnp.max(jnp.abs(out32 - ref))
    assert jnp.allclose(out32, ref, atol=5e-5, rtol=5e-5), f"f32 mismatch: {err32}"

    # bf16 fast path (default): halved HBM traffic on the backbone matmul;
    # looser tolerance vs the f32 reference.
    fwd_bf16 = jax.jit(lambda xx, pp: hyp_contrastive_forward(xx, pp, use_bf16=True))
    out16 = jax.block_until_ready(fwd_bf16(x, params))
    assert out16.shape == (B, features_dim)
    err16 = jnp.max(jnp.abs(out16 - ref))
    assert jnp.allclose(out16, ref, atol=2e-2, rtol=2e-2), f"bf16 mismatch: {err16}"

    print("KERNEL_OK")
</pallas_src>

<mosaic_0001>
module attributes {stable_mosaic.version = 11 : i64} {
  func.func @kernel(%arg0: i32, %arg1: i32, %arg2: memref<8x1024xf32, #tpu.memory_space<vmem>>, %arg3: memref<1024x128xf32, #tpu.memory_space<vmem>>, %arg4: memref<1x128xf32, #tpu.memory_space<vmem>>, %arg5: memref<128x128xf32, #tpu.memory_space<vmem>>, %arg6: memref<1x128xf32, #tpu.memory_space<vmem>>, %arg7: memref<128x128xf32, #tpu.memory_space<vmem>>, %arg8: memref<1x128xf32, #tpu.memory_space<vmem>>, %arg9: memref<8x128xf32, #tpu.memory_space<vmem>>, %arg10: memref<8x128xf32, #tpu.memory_space<vmem>>) attributes {dimension_semantics = [#tpu.dimension_semantics<parallel>, #tpu.dimension_semantics<arbitrary>], iteration_bounds = array<i64: 1, 1>, scalar_prefetch = 0 : i64, scratch_operands = 1 : i64, tpu.core_type = #tpu.core_type<tc>, window_params = [{transform_indices = @transform_0, window_bounds = array<i64: 8, 1024>}, {pipeline_mode = #tpu.pipeline_mode<synchronous>, transform_indices = @transform_1, window_bounds = array<i64: 1024, 128>}, {pipeline_mode = #tpu.pipeline_mode<synchronous>, transform_indices = @transform_2, window_bounds = array<i64: 1, 128>}, {pipeline_mode = #tpu.pipeline_mode<synchronous>, transform_indices = @transform_3, window_bounds = array<i64: 128, 128>}, {pipeline_mode = #tpu.pipeline_mode<synchronous>, transform_indices = @transform_4, window_bounds = array<i64: 1, 128>}, {pipeline_mode = #tpu.pipeline_mode<synchronous>, transform_indices = @transform_5, window_bounds = array<i64: 128, 128>}, {pipeline_mode = #tpu.pipeline_mode<synchronous>, transform_indices = @transform_6, window_bounds = array<i64: 1, 128>}, {transform_indices = @transform_7, window_bounds = array<i64: 8, 128>}]} {
    %c0_i32 = arith.constant 0 : i32
    %0 = arith.cmpi eq, %arg1, %c0_i32 : i32
    %1 = arith.extui %0 : i1 to i32
    %c0_i32_0 = arith.constant 0 : i32
    %2 = arith.cmpi ne, %1, %c0_i32_0 : i32
    scf.if %2 {
      %c0_10 = arith.constant 0 : index
      %c0_11 = arith.constant 0 : index
      %12 = vector.load %arg4[%c0_10, %c0_11] : memref<1x128xf32, #tpu.memory_space<vmem>>, vector<1x128xf32>
      %13 = vector.shape_cast %12 : vector<1x128xf32> to vector<1x128xf32>
      %14 = vector.broadcast %13 : vector<1x128xf32> to vector<8x128xf32>
      %c0_12 = arith.constant 0 : index
      %c0_13 = arith.constant 0 : index
      %15 = vector.load %arg10[%c0_12, %c0_13] : memref<8x128xf32, #tpu.memory_space<vmem>>, vector<8x128xf32>
      tpu.vector_store %arg10[%c0_12, %c0_13], %14 {strides = array<i32>} : memref<8x128xf32, #tpu.memory_space<vmem>>, vector<8x128xf32>,
    } else {
    }
    %c0 = arith.constant 0 : index
    %c0_1 = arith.constant 0 : index
    %3 = vector.load %arg3[%c0, %c0_1] : memref<1024x128xf32, #tpu.memory_space<vmem>>, vector<1024x128xf32>
    %c0_2 = arith.constant 0 : index
    %c0_3 = arith.constant 0 : index
    %4 = vector.load %arg10[%c0_2, %c0_3] : memref<8x128xf32, #tpu.memory_space<vmem>>, vector<8x128xf32>
    %c0_4 = arith.constant 0 : index
    %c0_5 = arith.constant 0 : index
    %5 = vector.load %arg2[%c0_4, %c0_5] : memref<8x1024xf32, #tpu.memory_space<vmem>>, vector<8x1024xf32>
    %cst = arith.constant dense<0.000000e+00> : vector<8x128xf32>
    %6 = tpu.matmul %5, %3, %cst {dimension_numbers = #tpu.dot_dimension_numbers<[1], [0], [0], [1], [0, 0, 1, 1], [], []>} : vector<8x1024xf32>, vector<1024x128xf32>, vector<8x128xf32> -> vector<8x128xf32>
    %7 = arith.addf %4, %6 : vector<8x128xf32>
    %c0_6 = arith.constant 0 : index
    %c0_7 = arith.constant 0 : index
    %8 = vector.load %arg10[%c0_6, %c0_7] : memref<8x128xf32, #tpu.memory_space<vmem>>, vector<8x128xf32>
    tpu.vector_store %arg10[%c0_6, %c0_7], %7 {strides = array<i32>} : memref<8x128xf32, #tpu.memory_space<vmem>>, vector<8x128xf32>,
    %c0_i32_8 = arith.constant 0 : i32
    %9 = arith.cmpi eq, %arg1, %c0_i32_8 : i32
    %10 = arith.extui %9 : i1 to i32
    %c0_i32_9 = arith.constant 0 : i32
    %11 = arith.cmpi ne, %10, %c0_i32_9 : i32
    scf.if %11 {
      %c0_10 = arith.constant 0 : index
      %c0_11 = arith.constant 0 : index
      %12 = vector.load %arg10[%c0_10, %c0_11] : memref<8x128xf32, #tpu.memory_space<vmem>>, vector<8x128xf32>
      %cst_12 = arith.constant 0.000000e+00 : f32
      %13 = vector.broadcast %cst_12 : f32 to vector<8x128xf32>
      %14 = arith.maximumf %12, %13 : vector<8x128xf32>
      %c0_13 = arith.constant 0 : index
      %c0_14 = arith.constant 0 : index
      %15 = vector.load %arg5[%c0_13, %c0_14] : memref<128x128xf32, #tpu.memory_space<vmem>>, vector<128x128xf32>
      %cst_15 = arith.constant dense<0.000000e+00> : vector<8x128xf32>
      %16 = tpu.matmul %14, %15, %cst_15 {dimension_numbers = #tpu.dot_dimension_numbers<[1], [0], [0], [1], [0, 0, 1, 1], [], []>} : vector<8x128xf32>, vector<128x128xf32>, vector<8x128xf32> -> vector<8x128xf32>
      %c0_16 = arith.constant 0 : index
      %c0_17 = arith.constant 0 : index
      %17 = vector.load %arg6[%c0_16, %c0_17] : memref<1x128xf32, #tpu.memory_space<vmem>>, vector<1x128xf32>
      %18 = vector.broadcast %17 : vector<1x128xf32> to vector<8x128xf32>
      %19 = arith.addf %16, %18 : vector<8x128xf32>
      %cst_18 = arith.constant 0.000000e+00 : f32
      %20 = vector.broadcast %cst_18 : f32 to vector<8x128xf32>
      %21 = arith.maximumf %19, %20 : vector<8x128xf32>
      %c0_19 = arith.constant 0 : index
      %c0_20 = arith.constant 0 : index
      %22 = vector.load %arg7[%c0_19, %c0_20] : memref<128x128xf32, #tpu.memory_space<vmem>>, vector<128x128xf32>
      %cst_21 = arith.constant dense<0.000000e+00> : vector<8x128xf32>
      %23 = tpu.matmul %21, %22, %cst_21 {dimension_numbers = #tpu.dot_dimension_numbers<[1], [0], [0], [1], [0, 0, 1, 1], [], []>} : vector<8x128xf32>, vector<128x128xf32>, vector<8x128xf32> -> vector<8x128xf32>
      %c0_22 = arith.constant 0 : index
      %c0_23 = arith.constant 0 : index
      %24 = vector.load %arg8[%c0_22, %c0_23] : memref<1x128xf32, #tpu.memory_space<vmem>>, vector<1x128xf32>
      %25 = vector.broadcast %24 : vector<1x128xf32> to vector<8x128xf32>
      %26 = arith.addf %23, %25 : vector<8x128xf32>
      %27 = arith.mulf %26, %26 : vector<8x128xf32>
      %cst_24 = arith.constant dense<0.000000e+00> : vector<8xf32>
      %28 = vector.multi_reduction <add>, %27, %cst_24 [1] : vector<8x128xf32> to vector<8xf32>
      %29 = vector.shape_cast %28 : vector<8xf32> to vector<8x1xf32>
      %30 = math.sqrt %29 : vector<8x1xf32>
      %cst_25 = arith.constant 9.99999996E-13 : f32
      %31 = vector.broadcast %cst_25 : f32 to vector<8x1xf32>
      %32 = arith.maximumf %30, %31 : vector<8x1xf32>
      %cst_26 = arith.constant 1.000000e+00 : f32
      %33 = vector.broadcast %cst_26 : f32 to vector<8x1xf32>
      %34 = arith.divf %33, %32 : vector<8x1xf32>
      %35 = vector.broadcast %34 : vector<8x1xf32> to vector<8x128xf32>
      %36 = arith.mulf %26, %35 : vector<8x128xf32>
      %37 = arith.mulf %30, %34 : vector<8x1xf32>
      %cst_27 = arith.constant 9.99999974E-6 : f32
      %38 = vector.broadcast %cst_27 : f32 to vector<8x1xf32>
      %39 = arith.maximumf %37, %38 : vector<8x1xf32>
      %cst_28 = arith.constant 1.500000e+01 : f32
      %40 = vector.broadcast %cst_28 : f32 to vector<8x1xf32>
      %41 = arith.minimumf %39, %40 : vector<8x1xf32>
      %42 = math.tanh %41 : vector<8x1xf32>
      %43 = arith.divf %42, %39 : vector<8x1xf32>
      %44 = vector.broadcast %43 : vector<8x1xf32> to vector<8x128xf32>
      %45 = arith.mulf %36, %44 : vector<8x128xf32>
      %46 = arith.mulf %45, %45 : vector<8x128xf32>
      %cst_29 = arith.constant dense<0.000000e+00> : vector<8xf32>
      %47 = vector.multi_reduction <add>, %46, %cst_29 [1] : vector<8x128xf32> to vector<8xf32>
      %48 = vector.shape_cast %47 : vector<8xf32> to vector<8x1xf32>
      %49 = math.sqrt %48 : vector<8x1xf32>
      %cst_30 = arith.constant 9.99999974E-6 : f32
      %50 = vector.broadcast %cst_30 : f32 to vector<8x1xf32>
      %51 = arith.maximumf %49, %50 : vector<8x1xf32>
      %cst_31 = arith.constant 9.990000e-01 : f32
      %52 = vector.broadcast %cst_31 : f32 to vector<8x1xf32>
      %53 = arith.cmpf ogt, %51, %52 : vector<8x1xf32>
      %cst_32 = arith.constant 9.990000e-01 : f32
      %54 = vector.broadcast %cst_32 : f32 to vector<8x1xf32>
      %55 = arith.divf %54, %51 : vector<8x1xf32>
      %cst_33 = arith.constant 1.000000e+00 : f32
      %56 = vector.broadcast %cst_33 : f32 to vector<8x1xf32>
      %57 = arith.select %53, %55, %56 : vector<8x1xi1>, vector<8x1xf32>
      %58 = vector.broadcast %57 : vector<8x1xf32> to vector<8x128xf32>
      %59 = arith.mulf %45, %58 : vector<8x128xf32>
      %c0_34 = arith.constant 0 : index
      %c0_35 = arith.constant 0 : index
      %60 = vector.load %arg9[%c0_34, %c0_35] : memref<8x128xf32, #tpu.memory_space<vmem>>, vector<8x128xf32>
      tpu.vector_store %arg9[%c0_34, %c0_35], %59 {strides = array<i32>} : memref<8x128xf32, #tpu.memory_space<vmem>>, vector<8x128xf32>,
    } else {
    }
    return
  }
  func.func @transform_0(%arg0: i32, %arg1: i32) -> (i32, i32) {
    %c0_i32 = arith.constant 0 : i32
    return %arg0, %arg1 : i32, i32
  }
  func.func @transform_1(%arg0: i32, %arg1: i32) -> (i32, i32) {
    %c0_i32 = arith.constant 0 : i32
    %c0_i32_0 = arith.constant 0 : i32
    %c0_i32_1 = arith.constant 0 : i32
    return %c0_i32, %c0_i32_0 : i32, i32
  }
  func.func @transform_2(%arg0: i32, %arg1: i32) -> (i32, i32) {
    %c0_i32 = arith.constant 0 : i32
    %c0_i32_0 = arith.constant 0 : i32
    %c0_i32_1 = arith.constant 0 : i32
    return %c0_i32, %c0_i32_0 : i32, i32
  }
  func.func @transform_3(%arg0: i32, %arg1: i32) -> (i32, i32) {
    %c0_i32 = arith.constant 0 : i32
    %c0_i32_0 = arith.constant 0 : i32
    %c0_i32_1 = arith.constant 0 : i32
    return %c0_i32, %c0_i32_0 : i32, i32
  }
  func.func @transform_4(%arg0: i32, %arg1: i32) -> (i32, i32) {
    %c0_i32 = arith.constant 0 : i32
    %c0_i32_0 = arith.constant 0 : i32
    %c0_i32_1 = arith.constant 0 : i32
    return %c0_i32, %c0_i32_0 : i32, i32
  }
  func.func @transform_5(%arg0: i32, %arg1: i32) -> (i32, i32) {
    %c0_i32 = arith.constant 0 : i32
    %c0_i32_0 = arith.constant 0 : i32
    %c0_i32_1 = arith.constant 0 : i32
    return %c0_i32, %c0_i32_0 : i32, i32
  }
  func.func @transform_6(%arg0: i32, %arg1: i32) -> (i32, i32) {
    %c0_i32 = arith.constant 0 : i32
    %c0_i32_0 = arith.constant 0 : i32
    %c0_i32_1 = arith.constant 0 : i32
    return %c0_i32, %c0_i32_0 : i32, i32
  }
  func.func @transform_7(%arg0: i32, %arg1: i32) -> (i32, i32) {
    %c0_i32 = arith.constant 0 : i32
    %c0_i32_0 = arith.constant 0 : i32
    return %arg0, %c0_i32 : i32, i32
  }
}

</mosaic_0001>

<bundles_post_ra>
// kernel: _lambda_.1
= control target key start
LH: loop header
LB: loop body
LE: loop exit
PB: predicated region body
PF: predicated region fallthrough
CT: control target
= control target key end

     0   :  { %12 = vsyncpa [#allocation4], 0  ;;  %s1601_s0 = inlined_call_operand.hbm [shape: f32[8,1024], index: 0, kind: input, shape index: {}]   ;;  %s1602_s1 = inlined_call_operand.hbm [shape: f32[1024,128], index: 1, kind: input, shape index: {}]   ;;  %s1603_s2 = inlined_call_operand.hbm [shape: f32[1,128], index: 2, kind: input, shape index: {}]   ;;  %s1604_s3 = inlined_call_operand.hbm [shape: f32[128,128], index: 3, kind: input, shape index: {}]   ;;  %s1605_s4 = inlined_call_operand.hbm [shape: f32[1,128], index: 4, kind: input, shape index: {}]   ;;  %s1606_s5 = inlined_call_operand.hbm [shape: f32[128,128], index: 5, kind: input, shape index: {}]   ;;  %s1607_s6 = inlined_call_operand.hbm [shape: f32[1,128], index: 6, kind: input, shape index: {}]   ;;  %s1608_s7 = inlined_call_operand.hbm [shape: f32[8,128], index: 7, kind: output, shape index: {}]  }
   0x1   :  { %13 = vsyncpa [#allocation7], 0 }
   0x2   :  { %14 = vsyncpa [#allocation10], 0 }
   0x3   :  { %15 = vsyncpa [#allocation13], 0 }
   0x4   :  { %16 = vsyncpa [#allocation5], 0  ;;  %s1427_s24 = smov [#allocation6]   ;;  %s1241_s28 = scalar_lea.hbm %s1602_s1, 16384 }
   0x5   :  { %s32_s25 = sshll.u32 %s1427_s24, 4  ;;  %p1242_p0 = scmp.ne.s32.totalorder %s1602_s1, %s1241_s28  ;;  %s33_s25 = int_to_ptr.vmem [resolvable:$true] %s32_s25 }
   0x6   :  { %p1245_p1 = scmp.lt.u32.totalorder %s1241_s28, %s1602_s1 }
   0x8   :  { %p1247_p2 = pnand %p1245_p1, %p1242_p0 }
   0xa   :  { %1250 = shalt.err (!%p1247_p2)
}
   0xb   :  { %s1251_s10 = scalar_lea.vmem %s33_s25, 16384  ;;  %p1256_p4 = scmp.lt.s32.totalorder %s33_s25, %s33_s25 }
   0xc   :  { %p1252_p3 = scmp.ne.s32.totalorder %s33_s25, %s1251_s10  ;;  %p1257_p5 = scmp.lt.s32.totalorder %s1251_s10, %s1251_s10 }
   0xe   :  { %p1258_p6 = por %p1257_p5, %p1256_p4 }
  0x10   :  { %p1259_p7 = pnand %p1258_p6, %p1252_p3 }
  0x12   :  { %1262 = shalt.err (!%p1259_p7)
}
  0x13   :  { %s1428_s11 = smov 128   ;;  %s1429_s12 = smov 8  }
  0x14   :  { %38 = dma.hbm_to_vmem [thread:$0]  %s1602_s1, 16384, %s33_s25, [#allocation7], %s1428_s11, %s1428_s11, %s1429_s12  }
  0x15   :  { %s1430_s15 = smov [#allocation9]   ;;  %s1431_s17 = smov [#allocation12]  }
  0x16   :  { %s54_s16 = sshll.u32 %s1430_s15, 4  ;;  %s76_s18 = sshll.u32 %s1431_s17, 4  ;;  %s55_s16 = int_to_ptr.vmem [resolvable:$true] %s54_s16  ;;  %s77_s18 = int_to_ptr.vmem [resolvable:$true] %s76_s18 }
  0x17   :  { %s1263_s21 = scalar_lea.hbm %s1604_s3, 2048 }
  0x18   :  { %p1264_p8 = scmp.ne.s32.totalorder %s1604_s3, %s1263_s21  ;;  %p1267_p9 = scmp.lt.u32.totalorder %s1263_s21, %s1604_s3 }
  0x1a   :  { %p1269_p10 = pnand %p1267_p9, %p1264_p8 }
  0x1c   :  { %1272 = shalt.err (!%p1269_p10)
}
  0x1d   :  { %s1273_s1 = scalar_lea.vmem %s55_s16, 2048  ;;  %p1278_p12 = scmp.lt.s32.totalorder %s55_s16, %s55_s16 }
  0x1e   :  { %p1274_p11 = scmp.ne.s32.totalorder %s55_s16, %s1273_s1  ;;  %p1279_p13 = scmp.lt.s32.totalorder %s1273_s1, %s1273_s1 }
  0x20   :  { %p1280_p0 = por %p1279_p13, %p1278_p12 }
  0x22   :  { %p1281_p1 = pnand %p1280_p0, %p1274_p11 }
  0x24   :  { %1284 = shalt.err (!%p1281_p1)
}
  0x25   :  { %60 = dma.hbm_to_vmem [thread:$0]  %s1604_s3, 2048, %s55_s16, [#allocation10], %s1428_s11, %s1428_s11, %s1429_s12  }
  0x26   :  { %s1285_s30 = scalar_lea.hbm %s1606_s5, 2048 }
  0x27   :  { %p1286_p2 = scmp.ne.s32.totalorder %s1606_s5, %s1285_s30  ;;  %p1289_p3 = scmp.lt.u32.totalorder %s1285_s30, %s1606_s5 }
  0x29   :  { %p1291_p4 = pnand %p1289_p3, %p1286_p2 }
  0x2b   :  { %1294 = shalt.err (!%p1291_p4)
}
  0x2c   :  { %s1295_s14 = scalar_lea.vmem %s77_s18, 2048  ;;  %p1300_p6 = scmp.lt.s32.totalorder %s77_s18, %s77_s18 }
  0x2d   :  { %p1296_p5 = scmp.ne.s32.totalorder %s77_s18, %s1295_s14  ;;  %p1301_p7 = scmp.lt.s32.totalorder %s1295_s14, %s1295_s14 }
  0x2f   :  { %p1302_p8 = por %p1301_p7, %p1300_p6 }
  0x31   :  { %p1303_p9 = pnand %p1302_p8, %p1296_p5 }
  0x33   :  { %1306 = shalt.err (!%p1303_p9)
}
  0x34   :  { %82 = dma.hbm_to_vmem [thread:$0]  %s1606_s5, 2048, %s77_s18, [#allocation13], %s1428_s11, %s1428_s11, %s1429_s12  }
  0x35   :  { %s1432_s16 = smov [#allocation3]   ;;  %s1433_s19 = smov [#allocation8]  }
  0x36   :  { %s23_s17 = sshll.u32 %s1432_s16, 4  ;;  %s45_s20 = sshll.u32 %s1433_s19, 4  ;;  %s24_s17 = int_to_ptr.vmem [resolvable:$true] %s23_s17  ;;  %s46_s20 = int_to_ptr.vmem [resolvable:$true] %s45_s20 }
  0x37   :  { %s1307_s23 = scalar_lea.hbm %s1601_s0, 1024 }
  0x38   :  { %p1308_p10 = scmp.ne.s32.totalorder %s1601_s0, %s1307_s23  ;;  %p1311_p11 = scmp.lt.u32.totalorder %s1307_s23, %s1601_s0 }
  0x3a   :  { %p1313_p12 = pnand %p1311_p11, %p1308_p10 }
  0x3c   :  { %1316 = shalt.err (!%p1313_p12)
}
  0x3d   :  { %s1317_s5 = scalar_lea.vmem %s24_s17, 1024  ;;  %p1322_p0 = scmp.lt.s32.totalorder %s24_s17, %s24_s17 }
  0x3e   :  { %p1318_p13 = scmp.ne.s32.totalorder %s24_s17, %s1317_s5  ;;  %p1323_p1 = scmp.lt.s32.totalorder %s1317_s5, %s1317_s5 }
  0x40   :  { %p1324_p2 = por %p1323_p1, %p1322_p0 }
  0x42   :  { %p1325_p3 = pnand %p1324_p2, %p1318_p13 }
  0x44   :  { %1328 = shalt.err (!%p1325_p3)
}
  0x45   :  { %26 = dma.hbm_to_vmem [thread:$0]  %s1601_s0, 1024, %s24_s17, [#allocation4]  }
  0x46   :  { %s1329_s28 = scalar_lea.hbm %s1603_s2, 16 }
  0x47   :  { %p1330_p4 = scmp.ne.s32.totalorder %s1603_s2, %s1329_s28  ;;  %p1333_p5 = scmp.lt.u32.totalorder %s1329_s28, %s1603_s2 }
  0x49   :  { %p1335_p6 = pnand %p1333_p5, %p1330_p4 }
  0x4b   :  { %1338 = shalt.err (!%p1335_p6)
}
  0x4c   :  { %s1339_s10 = scalar_lea.vmem %s46_s20, 16  ;;  %s1343_s13 = scalar_lea.vmem %s46_s20, 32 }
  0x4d   :  { %p1340_p7 = scmp.ne.s32.totalorder %s46_s20, %s1339_s10  ;;  %p1344_p8 = scmp.lt.s32.totalorder %s46_s20, %s46_s20 }
  0x4e   :  { %p1345_p9 = scmp.lt.s32.totalorder %s1343_s13, %s1339_s10 }
  0x50   :  { %p1346_p10 = por %p1345_p9, %p1344_p8 }
  0x52   :  { %p1347_p11 = pnand %p1346_p10, %p1340_p7 }
  0x54   :  { %1350 = shalt.err (!%p1347_p11)
}
  0x55   :  { %48 = dma.hbm_to_vmem [thread:$0]  %s1603_s2, 16, %s46_s20, [#allocation7]  }
  0x56   :  { %s1434_s3 = smov [#allocation11]   ;;  %s1435_s16 = smov [#allocation14]  }
  0x57   :  { %s67_s15 = sshll.u32 %s1434_s3, 4  ;;  %s89_s17 = sshll.u32 %s1435_s16, 4  ;;  %s68_s15 = int_to_ptr.vmem [resolvable:$true] %s67_s15  ;;  %s90_s17 = int_to_ptr.vmem [resolvable:$true] %s89_s17 }
  0x58   :  { %s1351_s22 = scalar_lea.hbm %s1605_s4, 16 }
  0x59   :  { %p1352_p12 = scmp.ne.s32.totalorder %s1605_s4, %s1351_s22  ;;  %p1355_p13 = scmp.lt.u32.totalorder %s1351_s22, %s1605_s4 }
  0x5b   :  { %p1357_p0 = pnand %p1355_p13, %p1352_p12 }
  0x5d   :  { %1360 = shalt.err (!%p1357_p0)
}
  0x5e   :  { %s1361_s2 = scalar_lea.vmem %s68_s15, 16  ;;  %s1365_s20 = scalar_lea.vmem %s68_s15, 32 }
  0x5f   :  { %p1362_p1 = scmp.ne.s32.totalorder %s68_s15, %s1361_s2  ;;  %p1366_p2 = scmp.lt.s32.totalorder %s68_s15, %s68_s15 }
  0x60   :  { %p1367_p3 = scmp.lt.s32.totalorder %s1365_s20, %s1361_s2 }
  0x62   :  { %p1368_p4 = por %p1367_p3, %p1366_p2 }
  0x64   :  { %p1369_p5 = pnand %p1368_p4, %p1362_p1 }
  0x66   :  { %1372 = shalt.err (!%p1369_p5)
}
  0x67   :  { %70 = dma.hbm_to_vmem [thread:$0]  %s1605_s4, 16, %s68_s15, [#allocation10]  }
  0x68   :  { %s1373_s18 = scalar_lea.hbm %s1607_s6, 16 }
  0x69   :  { %p1374_p6 = scmp.ne.s32.totalorder %s1607_s6, %s1373_s18  ;;  %p1377_p7 = scmp.lt.u32.totalorder %s1373_s18, %s1607_s6 }
  0x6b   :  { %p1379_p8 = pnand %p1377_p7, %p1374_p6 }
  0x6d   :  { %1382 = shalt.err (!%p1379_p8)
}
  0x6e   :  { %s1383_s8 = scalar_lea.vmem %s90_s17, 16  ;;  %s1387_s9 = scalar_lea.vmem %s90_s17, 32 }
  0x6f   :  { %p1384_p9 = scmp.ne.s32.totalorder %s90_s17, %s1383_s8  ;;  %p1388_p10 = scmp.lt.s32.totalorder %s90_s17, %s90_s17 }
  0x70   :  { %p1389_p11 = scmp.lt.s32.totalorder %s1387_s9, %s1383_s8 }
  0x72   :  { %p1390_p12 = por %p1389_p11, %p1388_p10 }
  0x74   :  { %p1391_p13 = pnand %p1390_p12, %p1384_p9 }
  0x76   :  { %1394 = shalt.err (!%p1391_p13)
}
  0x77   :  { %92 = dma.hbm_to_vmem [thread:$0]  %s1607_s6, 16, %s90_s17, [#allocation13]  }
  0x78   :  { %1417 = dma.done.wait [#allocation4], 1024  }
  0x79   :  { %1418 = vsyncadd [#allocation4], 4294966272 }
  0x7a   :  { %1419 = dma.done.wait [#allocation7], 16400  }
  0x7b   :  { %1420 = vsyncadd [#allocation7], 4294950896 }
  0x7c   :  { %1421 = dma.done.wait [#allocation10], 2064  }
  0x7d   :  { %1422 = vsyncadd [#allocation10], 4294965232 }
  0x7e   :  { %1423 = dma.done.wait [#allocation13], 2064  }
  0x7f   :  { %1424 = vsyncadd [#allocation13], 4294965232  ;;  %v142_v0 = vld [vmem:[#allocation6 + $0x80] sm:$0xff]  ;;  %v143_v1 = vld [vmem:[#allocation6 + $0x88] sm:$0xff]  ;;  %vm1437_vm0 = vmmov 0   ;;  %s1439_s6 = smov [#allocation15]  }
  0x80   :  { %v174_v2 = vld [vmem:[#allocation6 + $0x180] sm:$0xff]  ;;  %v1040_v3 = vpack.c.bf16 %v143_v1, %v142_v0  ;;  %v175_v4 = vld [vmem:[#allocation6 + $0x188] sm:$0xff]  ;;  %v144_v11 = vld [vmem:[#allocation6 + $0x90] sm:$0xff]  ;;  %s781_s13 = sshll.u32 %s1439_s6, 4  ;;  %s782_s13 = int_to_ptr.vmem [resolvable:$true] %s781_s13 }
  0x81   :  { %v126_v5 = vld [vmem:[#allocation6] sm:$0xff]  ;;  %v127_v6 = vld [vmem:[#allocation6 + $0x8] sm:$0xff]  ;;  %v1072_v7 = vpack.c.bf16 %v175_v4, %v174_v2  ;;  %v145_v13 = vld [vmem:[#allocation6 + $0x98] sm:$0xff]  ;;  %s1395_s0 = scalar_lea.vmem %s782_s13, 128  ;;  %p1400_p1 = scmp.lt.s32.totalorder %s782_s13, %s782_s13 }
  0x82   :  { %v1042_v8 = vpack.c.bf16 %v127_v6, %v126_v5  ;;  %v158_v9 = vld [vmem:[#allocation6 + $0x100] sm:$0xff]  ;;  %v159_v10 = vld [vmem:[#allocation6 + $0x108] sm:$0xff]  ;;  %1041 = vmatprep.subr.bf16.mxu0 %v1040_v3  ;;  %v176_v14 = vld [vmem:[#allocation6 + $0x190] sm:$0xff]  ;;  %v1044_v16 = vpack.c.bf16 %v145_v13, %v144_v11  ;;  %p1396_p0 = scmp.ne.s32.totalorder %s782_s13, %s1395_s0  ;;  %p1401_p2 = scmp.lt.s32.totalorder %s1395_s0, %s1395_s0 }
  0x83   :  { %v1074_v12 = vpack.c.bf16 %v159_v10, %v158_v9  ;;  %v177_v15 = vld [vmem:[#allocation6 + $0x198] sm:$0xff]  ;;  %1073 = vmatprep.subr.bf16.mxu1 %v1072_v7  ;;  %v128_v18 = vld [vmem:[#allocation6 + $0x10] sm:$0xff]  ;;  %v146_v23 = vld [vmem:[#allocation6 + $0xa0] sm:$0xff] }
  0x84   :  { %1043 = vmatpush3.bf16.msra.mxu0 %v1042_v8  ;;  %v1076_v17 = vpack.c.bf16 %v177_v15, %v176_v14  ;;  %v129_v19 = vld [vmem:[#allocation6 + $0x18] sm:$0xff]  ;;  %v160_v20 = vld [vmem:[#allocation6 + $0x110] sm:$0xff]  ;;  %v147_v24 = vld [vmem:[#allocation6 + $0xa8] sm:$0xff]  ;;  %p1402_p3 = por %p1401_p2, %p1400_p1 }
  0x85   :  { %1075 = vmatpush3.bf16.msra.mxu1 %v1074_v12  ;;  %v1046_v21 = vpack.c.bf16 %v129_v19, %v128_v18  ;;  %v161_v22 = vld [vmem:[#allocation6 + $0x118] sm:$0xff]  ;;  %1045 = vmatprep.subr.bf16.mxu0 %v1044_v16  ;;  %v1048_v26 = vpack.c.bf16 %v147_v24, %v146_v23  ;;  %v178_v27 = vld [vmem:[#allocation6 + $0x1a0] sm:$0xff]  ;;  %v179_v28 = vld [vmem:[#allocation6 + $0x1a8] sm:$0xff] }
  0x86   :  { %1077 = vmatprep.subr.bf16.mxu1 %v1076_v17  ;;  %v1078_v25 = vpack.c.bf16 %v161_v22, %v160_v20  ;;  %v130_v29 = vld [vmem:[#allocation6 + $0x20] sm:$0xff]  ;;  %v1080_v30 = vpack.c.bf16 %v179_v28, %v178_v27  ;;  %v131_v31 = vld [vmem:[#allocation6 + $0x28] sm:$0xff]  ;;  %v148_v35 = vld [vmem:[#allocation6 + $0xb0] sm:$0xff]  ;;  %p1403_p4 = pnand %p1402_p3, %p1396_p0 }
  0x87   :  { %v162_v32 = vld [vmem:[#allocation6 + $0x120] sm:$0xff]  ;;  %v163_v33 = vld [vmem:[#allocation6 + $0x128] sm:$0xff]  ;;  %v1050_v34 = vpack.c.bf16 %v131_v31, %v130_v29  ;;  %v149_v36 = vld [vmem:[#allocation6 + $0xb8] sm:$0xff] }
  0x88   :  { %1047 = vmatpush3.bf16.msra.mxu0 %v1046_v21  ;;  %v180_v37 = vld [vmem:[#allocation6 + $0x1b0] sm:$0xff]  ;;  %v1082_v38 = vpack.c.bf16 %v163_v33, %v162_v32  ;;  %v1052_v39 = vpack.c.bf16 %v149_v36, %v148_v35  ;;  %v181_v40 = vld [vmem:[#allocation6 + $0x1b8] sm:$0xff]  ;;  %v150_v46 = vld [vmem:[#allocation6 + $0xc0] sm:$0xff] }
  0x89   :  { %1079 = vmatpush3.bf16.msra.mxu1 %v1078_v25  ;;  %1049 = vmatprep.subr.bf16.mxu0 %v1048_v26  ;;  %v132_v41 = vld [vmem:[#allocation6 + $0x30] sm:$0xff]  ;;  %v133_v42 = vld [vmem:[#allocation6 + $0x38] sm:$0xff]  ;;  %v1084_v43 = vpack.c.bf16 %v181_v40, %v180_v37  ;;  %v151_v47 = vld [vmem:[#allocation6 + $0xc8] sm:$0xff] }
  0x8a   :  { %1081 = vmatprep.subr.bf16.mxu1 %v1080_v30  ;;  %v164_v44 = vld [vmem:[#allocation6 + $0x130] sm:$0xff]  ;;  %v165_v45 = vld [vmem:[#allocation6 + $0x138] sm:$0xff]  ;;  %v182_v48 = vld [vmem:[#allocation6 + $0x1c0] sm:$0xff]  ;;  %v1054_v50 = vpack.c.bf16 %v133_v42, %v132_v41  ;;  %v1056_v52 = vpack.c.bf16 %v151_v47, %v150_v46 }
  0x8b   :  { %v183_v49 = vld [vmem:[#allocation6 + $0x1c8] sm:$0xff]  ;;  %v1086_v51 = vpack.c.bf16 %v165_v45, %v164_v44  ;;  %v134_v53 = vld [vmem:[#allocation6 + $0x40] sm:$0xff]  ;;  %v152_v58 = vld [vmem:[#allocation6 + $0xd0] sm:$0xff] }
  0x8c   :  { %1051 = vmatpush3.bf16.msra.mxu0 %v1050_v34  ;;  %v135_v54 = vld [vmem:[#allocation6 + $0x48] sm:$0xff]  ;;  %v166_v55 = vld [vmem:[#allocation6 + $0x140] sm:$0xff]  ;;  %v1088_v56 = vpack.c.bf16 %v183_v49, %v182_v48  ;;  %v153_v59 = vld [vmem:[#allocation6 + $0xd8] sm:$0xff] }
  0x8d   :  { %1083 = vmatpush3.bf16.msra.mxu1 %v1082_v38  ;;  %1053 = vmatprep.subr.bf16.mxu0 %v1052_v39  ;;  %v167_v57 = vld [vmem:[#allocation6 + $0x148] sm:$0xff]  ;;  %v184_v60 = vld [vmem:[#allocation6 + $0x1d0] sm:$0xff]  ;;  %v185_v61 = vld [vmem:[#allocation6 + $0x1d8] sm:$0xff]  ;;  %v1058_v62 = vpack.c.bf16 %v135_v54, %v134_v53  ;;  %v1060_v0 = vpack.c.bf16 %v153_v59, %v152_v58 }
  0x8e   :  { %1085 = vmatprep.subr.bf16.mxu1 %v1084_v43  ;;  %v1090_v63 = vpack.c.bf16 %v167_v57, %v166_v55  ;;  %v136_v1 = vld [vmem:[#allocation6 + $0x50] sm:$0xff]  ;;  %v137_v2 = vld [vmem:[#allocation6 + $0x58] sm:$0xff]  ;;  %v1092_v4 = vpack.c.bf16 %v185_v61, %v184_v60  ;;  %v154_v6 = vld [vmem:[#allocation6 + $0xe0] sm:$0xff] }
  0x8f   :  { %v168_v3 = vld [vmem:[#allocation6 + $0x150] sm:$0xff]  ;;  %v169_v5 = vld [vmem:[#allocation6 + $0x158] sm:$0xff]  ;;  %v155_v7 = vld [vmem:[#allocation6 + $0xe8] sm:$0xff]  ;;  %v1062_v10 = vpack.c.bf16 %v137_v2, %v136_v1 }
  0x90   :  { %1055 = vmatpush3.bf16.msra.mxu0 %v1054_v50  ;;  %v186_v8 = vld [vmem:[#allocation6 + $0x1e0] sm:$0xff]  ;;  %v187_v9 = vld [vmem:[#allocation6 + $0x1e8] sm:$0xff]  ;;  %v1094_v13 = vpack.c.bf16 %v169_v5, %v168_v3  ;;  %v1064_v14 = vpack.c.bf16 %v155_v7, %v154_v6  ;;  %v258_v17 = vld [vmem:[#allocation3 + $0x18] sm:$0xff] }
  0x91   :  { %1087 = vmatpush3.bf16.msra.mxu1 %v1086_v51  ;;  %1057 = vmatprep.subr.bf16.mxu0 %v1056_v52  ;;  %v138_v11 = vld [vmem:[#allocation6 + $0x60] sm:$0xff]  ;;  %v139_v12 = vld [vmem:[#allocation6 + $0x68] sm:$0xff]  ;;  %v1096_v18 = vpack.c.bf16 %v187_v9, %v186_v8  ;;  %v156_v20 = vld [vmem:[#allocation6 + $0xf0] sm:$0xff] }
  0x92   :  { %1089 = vmatprep.subr.bf16.mxu1 %v1088_v56  ;;  %v170_v15 = vld [vmem:[#allocation6 + $0x160] sm:$0xff]  ;;  %v256_v16 = vld [vmem:[#allocation3 + $0x8] sm:$0xff]  ;;  %v157_v21 = vld [vmem:[#allocation6 + $0xf8] sm:$0xff]  ;;  %397 = vmatprep.mubr.f32.mxu1 %v258_v17  ;;  %v1066_v24 = vpack.c.bf16 %v139_v12, %v138_v11 }
  0x93   :  { %v171_v19 = vld [vmem:[#allocation6 + $0x168] sm:$0xff]  ;;  %327 = vmatprep.mubr.f32.mxu0 %v256_v16  ;;  %v188_v22 = vld [vmem:[#allocation6 + $0x1f0] sm:$0xff]  ;;  %v189_v23 = vld [vmem:[#allocation6 + $0x1f8] sm:$0xff]  ;;  %v1068_v26 = vpack.c.bf16 %v157_v21, %v156_v20 }
  0x94   :  { %1059 = vmatpush3.bf16.msra.mxu0 %v1058_v62  ;;  %v1098_v25 = vpack.c.bf16 %v171_v19, %v170_v15  ;;  %v140_v27 = vld [vmem:[#allocation6 + $0x70] sm:$0xff]  ;;  %v141_v28 = vld [vmem:[#allocation6 + $0x78] sm:$0xff]  ;;  %v1100_v30 = vpack.c.bf16 %v189_v23, %v188_v22  ;;  %v206_v32 = vld [vmem:[#allocation6 + $0x280] sm:$0xff] }
  0x95   :  { %1091 = vmatpush3.bf16.msra.mxu1 %v1090_v63  ;;  %1061 = vmatprep.subr.bf16.mxu0 %v1060_v0  ;;  %v172_v29 = vld [vmem:[#allocation6 + $0x170] sm:$0xff]  ;;  %v173_v31 = vld [vmem:[#allocation6 + $0x178] sm:$0xff]  ;;  %v207_v33 = vld [vmem:[#allocation6 + $0x288] sm:$0xff]  ;;  %v1070_v36 = vpack.c.bf16 %v141_v28, %v140_v27 }
  0x96   :  { %1093 = vmatprep.subr.bf16.mxu1 %v1092_v4  ;;  %v238_v34 = vld [vmem:[#allocation6 + $0x380] sm:$0xff]  ;;  %v239_v35 = vld [vmem:[#allocation6 + $0x388] sm:$0xff]  ;;  %v1102_v37 = vpack.c.bf16 %v173_v31, %v172_v29  ;;  %v1104_v38 = vpack.c.bf16 %v207_v33, %v206_v32  ;;  %v208_v44 = vld [vmem:[#allocation6 + $0x290] sm:$0xff] }
  0x97   :  { %v190_v39 = vld [vmem:[#allocation6 + $0x200] sm:$0xff]  ;;  %v191_v40 = vld [vmem:[#allocation6 + $0x208] sm:$0xff]  ;;  %v1136_v42 = vpack.c.bf16 %v239_v35, %v238_v34  ;;  %v209_v45 = vld [vmem:[#allocation6 + $0x298] sm:$0xff] }
  0x98   :  { %1063 = vmatpush3.bf16.msra.mxu0 %v1062_v10  ;;  %v222_v41 = vld [vmem:[#allocation6 + $0x300] sm:$0xff]  ;;  %v223_v43 = vld [vmem:[#allocation6 + $0x308] sm:$0xff]  ;;  %v240_v46 = vld [vmem:[#allocation6 + $0x390] sm:$0xff]  ;;  %v1106_v50 = vpack.c.bf16 %v191_v40, %v190_v39  ;;  %v1108_v52 = vpack.c.bf16 %v209_v45, %v208_v44 }
  0x99   :  { %1095 = vmatpush3.bf16.msra.mxu1 %v1094_v13  ;;  %1065 = vmatprep.subr.bf16.mxu0 %v1064_v14  ;;  %v241_v47 = vld [vmem:[#allocation6 + $0x398] sm:$0xff]  ;;  %v255_v48 = vld [vmem:[#allocation3] sm:$0xff]  ;;  %v257_v49 = vld [vmem:[#allocation3 + $0x10] sm:$0xff]  ;;  %v1138_v51 = vpack.c.bf16 %v223_v43, %v222_v41 }
  0x9a   :  { %1097 = vmatprep.subr.bf16.mxu1 %v1096_v18  ;;  %v192_v53 = vld [vmem:[#allocation6 + $0x210] sm:$0xff]  ;;  %v193_v54 = vld [vmem:[#allocation6 + $0x218] sm:$0xff]  ;;  %v1140_v56 = vpack.c.bf16 %v241_v47, %v240_v46  ;;  %v210_v58 = vld [vmem:[#allocation6 + $0x2a0] sm:$0xff] }
  0x9b   :  { %v224_v55 = vld [vmem:[#allocation6 + $0x310] sm:$0xff]  ;;  %v225_v57 = vld [vmem:[#allocation6 + $0x318] sm:$0xff]  ;;  %v211_v59 = vld [vmem:[#allocation6 + $0x2a8] sm:$0xff]  ;;  %v1110_v62 = vpack.c.bf16 %v193_v54, %v192_v53 }
  0x9c   :  { %1067 = vmatpush3.bf16.msra.mxu0 %v1066_v24  ;;  %v242_v60 = vld [vmem:[#allocation6 + $0x3a0] sm:$0xff]  ;;  %v243_v61 = vld [vmem:[#allocation6 + $0x3a8] sm:$0xff]  ;;  %v1142_v63 = vpack.c.bf16 %v225_v57, %v224_v55  ;;  %v1112_v0 = vpack.c.bf16 %v211_v59, %v210_v58  ;;  %v212_v6 = vld [vmem:[#allocation6 + $0x2b0] sm:$0xff] }
  0x9d   :  { %1099 = vmatpush3.bf16.msra.mxu1 %v1098_v25  ;;  %1069 = vmatprep.subr.bf16.mxu0 %v1068_v26  ;;  %v194_v1 = vld [vmem:[#allocation6 + $0x220] sm:$0xff]  ;;  %v195_v2 = vld [vmem:[#allocation6 + $0x228] sm:$0xff]  ;;  %v1144_v4 = vpack.c.bf16 %v243_v61, %v242_v60  ;;  %v213_v7 = vld [vmem:[#allocation6 + $0x2b8] sm:$0xff] }
  0x9e   :  { %1101 = vmatprep.subr.bf16.mxu1 %v1100_v30  ;;  %v226_v3 = vld [vmem:[#allocation6 + $0x320] sm:$0xff]  ;;  %v227_v5 = vld [vmem:[#allocation6 + $0x328] sm:$0xff]  ;;  %v244_v8 = vld [vmem:[#allocation6 + $0x3b0] sm:$0xff]  ;;  %v1114_v10 = vpack.c.bf16 %v195_v2, %v194_v1  ;;  %v1116_v12 = vpack.c.bf16 %v213_v7, %v212_v6 }
  0x9f   :  { %v245_v9 = vld [vmem:[#allocation6 + $0x3b8] sm:$0xff]  ;;  %v1146_v11 = vpack.c.bf16 %v227_v5, %v226_v3  ;;  %v196_v13 = vld [vmem:[#allocation6 + $0x230] sm:$0xff]  ;;  %v214_v18 = vld [vmem:[#allocation6 + $0x2c0] sm:$0xff] }
  0xa0   :  { %1071 = vmatpush3.bf16.msra.mxu0 %v1070_v36  ;;  %v197_v14 = vld [vmem:[#allocation6 + $0x238] sm:$0xff]  ;;  %v228_v15 = vld [vmem:[#allocation6 + $0x330] sm:$0xff]  ;;  %v1148_v16 = vpack.c.bf16 %v245_v9, %v244_v8  ;;  %v215_v19 = vld [vmem:[#allocation6 + $0x2c8] sm:$0xff] }
  0xa1   :  { %1103 = vmatpush3.bf16.msra.mxu1 %v1102_v37  ;;  %1105 = vmatprep.subr.bf16.mxu0 %v1104_v38  ;;  %v229_v17 = vld [vmem:[#allocation6 + $0x338] sm:$0xff]  ;;  %v246_v20 = vld [vmem:[#allocation6 + $0x3c0] sm:$0xff]  ;;  %v247_v21 = vld [vmem:[#allocation6 + $0x3c8] sm:$0xff]  ;;  %v1118_v22 = vpack.c.bf16 %v197_v14, %v196_v13  ;;  %v1120_v26 = vpack.c.bf16 %v215_v19, %v214_v18 }
  0xa2   :  { %1137 = vmatprep.subr.bf16.mxu1 %v1136_v42  ;;  %v260_v23 = vld [vmem:[#allocation3 + $0x28] sm:$0xff]  ;;  %v262_v24 = vld [vmem:[#allocation3 + $0x38] sm:$0xff]  ;;  %v1150_v25 = vpack.c.bf16 %v229_v17, %v228_v15  ;;  %v198_v27 = vld [vmem:[#allocation6 + $0x240] sm:$0xff]  ;;  %v1152_v30 = vpack.c.bf16 %v247_v21, %v246_v20 }
  0xa3   :  { %328 = vmatmul.mubr.f32.vlgmr.msra.gmra.mrb[0].mxu0 %v255_v48  ;;  %v199_v28 = vld [vmem:[#allocation6 + $0x248] sm:$0xff]  ;;  %v230_v29 = vld [vmem:[#allocation6 + $0x340] sm:$0xff]  ;;  %v216_v32 = vld [vmem:[#allocation6 + $0x2d0] sm:$0xff] }
  0xa4   :  { %398 = vmatmul.mubr.f32.vlgmr.msra.gmra.mrb[0].mxu1 %v257_v49  ;;  %1107 = vmatpush3.bf16.msra.mxu0 %v1106_v50  ;;  %v231_v31 = vld [vmem:[#allocation6 + $0x348] sm:$0xff]  ;;  %v217_v33 = vld [vmem:[#allocation6 + $0x2d8] sm:$0xff]  ;;  %v248_v34 = vld [vmem:[#allocation6 + $0x3d0] sm:$0xff]  ;;  %v1122_v36 = vpack.c.bf16 %v199_v28, %v198_v27 }
  0xa5   :  { %1139 = vmatpush3.bf16.msra.mxu1 %v1138_v51  ;;  %1109 = vmatprep.subr.bf16.mxu0 %v1108_v52  ;;  %v249_v35 = vld [vmem:[#allocation6 + $0x3d8] sm:$0xff]  ;;  %v1154_v37 = vpack.c.bf16 %v231_v31, %v230_v29  ;;  %v1124_v38 = vpack.c.bf16 %v217_v33, %v216_v32  ;;  %v200_v39 = vld [vmem:[#allocation6 + $0x250] sm:$0xff]  ;;  %v218_v44 = vld [vmem:[#allocation6 + $0x2e0] sm:$0xff]  ;;  %v1438_v33 = vmov 0.0  }
  0xa6   :  { %1141 = vmatprep.subr.bf16.mxu1 %v1140_v56  ;;  %467 = vmatprep.mubr.f32.mxu0 %v260_v23  ;;  %v201_v40 = vld [vmem:[#allocation6 + $0x258] sm:$0xff]  ;;  %v232_v41 = vld [vmem:[#allocation6 + $0x350] sm:$0xff]  ;;  %v1156_v42 = vpack.c.bf16 %v249_v35, %v248_v34  ;;  %v219_v45 = vld [vmem:[#allocation6 + $0x2e8] sm:$0xff] }
  0xa7   :  { %537 = vmatprep.mubr.f32.mxu1 %v262_v24  ;;  %v233_v43 = vld [vmem:[#allocation6 + $0x358] sm:$0xff]  ;;  %v250_v46 = vld [vmem:[#allocation6 + $0x3e0] sm:$0xff]  ;;  %v251_v47 = vld [vmem:[#allocation6 + $0x3e8] sm:$0xff]  ;;  %v1126_v48 = vpack.c.bf16 %v201_v40, %v200_v39  ;;  %v1128_v50 = vpack.c.bf16 %v219_v45, %v218_v44 }
  0xa8   :  { %1111 = vmatpush3.bf16.msra.mxu0 %v1110_v62  ;;  %v1158_v49 = vpack.c.bf16 %v233_v43, %v232_v41  ;;  %v202_v51 = vld [vmem:[#allocation6 + $0x260] sm:$0xff]  ;;  %v203_v52 = vld [vmem:[#allocation6 + $0x268] sm:$0xff]  ;;  %v1160_v54 = vpack.c.bf16 %v251_v47, %v250_v46  ;;  %v220_v56 = vld [vmem:[#allocation6 + $0x2f0] sm:$0xff] }
  0xa9   :  { %1143 = vmatpush3.bf16.msra.mxu1 %v1142_v63  ;;  %1113 = vmatprep.subr.bf16.mxu0 %v1112_v0  ;;  %v234_v53 = vld [vmem:[#allocation6 + $0x360] sm:$0xff]  ;;  %v235_v55 = vld [vmem:[#allocation6 + $0x368] sm:$0xff]  ;;  %v221_v57 = vld [vmem:[#allocation6 + $0x2f8] sm:$0xff]  ;;  %v1130_v60 = vpack.c.bf16 %v203_v52, %v202_v51 }
  0xaa   :  { %1145 = vmatprep.subr.bf16.mxu1 %v1144_v4  ;;  %v252_v58 = vld [vmem:[#allocation6 + $0x3f0] sm:$0xff]  ;;  %v253_v59 = vld [vmem:[#allocation6 + $0x3f8] sm:$0xff]  ;;  %v1162_v61 = vpack.c.bf16 %v235_v55, %v234_v53  ;;  %v1132_v62 = vpack.c.bf16 %v221_v57, %v220_v56  ;;  %v259_v6 = vld [vmem:[#allocation3 + $0x20] sm:$0xff] }
  0xab   :  { %v204_v63 = vld [vmem:[#allocation6 + $0x270] sm:$0xff]  ;;  %v205_v0 = vld [vmem:[#allocation6 + $0x278] sm:$0xff]  ;;  %v1164_v1 = vpack.c.bf16 %v253_v59, %v252_v58  ;;  %v550_v8 = vld [vmem:[#allocation9] sm:$0xff] }
  0xac   :  { %1115 = vmatpush3.bf16.msra.mxu0 %v1114_v10  ;;  %v236_v2 = vld [vmem:[#allocation6 + $0x370] sm:$0xff]  ;;  %v237_v3 = vld [vmem:[#allocation6 + $0x378] sm:$0xff]  ;;  %v1134_v4 = vpack.c.bf16 %v205_v0, %v204_v63  ;;  %v554_v15 = vld [vmem:[#allocation9 + $0x20] sm:$0xff] }
  0xad   :  { %1147 = vmatpush3.bf16.msra.mxu1 %v1146_v11  ;;  %1117 = vmatprep.subr.bf16.mxu0 %v1116_v12  ;;  %v1166_v5 = vpack.c.bf16 %v237_v3, %v236_v2  ;;  %v261_v7 = vld [vmem:[#allocation3 + $0x30] sm:$0xff]  ;;  %v1436_v11 = vmov 0.0|0.0   ;;  %v553_v13 = vld [vmem:[#allocation9 + $0x18] sm:$0xff]  ;;  %v558_v21 = vld [vmem:[#allocation9 + $0x40] sm:$0xff] }
  0xae   :  { %1149 = vmatprep.subr.bf16.mxu1 %v1148_v16  ;;  %v551_v9 = vld [vmem:[#allocation9 + $0x8] sm:$0xff]  ;;  %v552_v10 = vld [vmem:[#allocation9 + $0x10] sm:$0xff]  ;;  %v557_v19 = vld [vmem:[#allocation9 + $0x38] sm:$0xff] }
  0xaf   :  { %v1169_v12 = vpack.c.bf16 %v551_v9, %v550_v8  ;;  %v1172_v14 = vpack.c.bf16 %v553_v13, %v552_v10  ;;  %v555_v16 = vld [vmem:[#allocation9 + $0x28] sm:$0xff]  ;;  %v556_v18 = vld [vmem:[#allocation9 + $0x30] sm:$0xff]  ;;  %v562_v27 = vld [vmem:[#allocation9 + $0x60] sm:$0xff] }
  0xb0   :  { %1119 = vmatpush3.bf16.msra.mxu0 %v1118_v22  ;;  %v1175_v17 = vpack.c.bf16 %v555_v16, %v554_v15  ;;  %v1178_v20 = vpack.c.bf16 %v557_v19, %v556_v18  ;;  %v559_v22 = vld [vmem:[#allocation9 + $0x48] sm:$0xff]  ;;  %v560_v24 = vld [vmem:[#allocation9 + $0x50] sm:$0xff]  ;;  %v565_v31 = vld [vmem:[#allocation9 + $0x78] sm:$0xff] }
  0xb1   :  { %1151 = vmatpush3.bf16.msra.mxu1 %v1150_v25  ;;  %1121 = vmatprep.subr.bf16.mxu0 %v1120_v26  ;;  %v1181_v23 = vpack.c.bf16 %v559_v22, %v558_v21  ;;  %v561_v25 = vld [vmem:[#allocation9 + $0x58] sm:$0xff]  ;;  %v563_v28 = vld [vmem:[#allocation9 + $0x68] sm:$0xff] }
  0xb2   :  { %1153 = vmatprep.subr.bf16.mxu1 %v1152_v30  ;;  %v1184_v26 = vpack.c.bf16 %v561_v25, %v560_v24  ;;  %v1187_v29 = vpack.c.bf16 %v563_v28, %v562_v27  ;;  %v564_v30 = vld [vmem:[#allocation9 + $0x70] sm:$0xff]  ;;  %v644_v34 = vld [vmem:[#allocation12] sm:$0xff]  ;;  %v651_v44 = vld [vmem:[#allocation12 + $0x38] sm:$0xff] }
  0xb3   :  { %v1190_v32 = vpack.c.bf16 %v565_v31, %v564_v30  ;;  %v645_v35 = vld [vmem:[#allocation12 + $0x8] sm:$0xff]  ;;  %v648_v40 = vld [vmem:[#allocation12 + $0x20] sm:$0xff]  ;;  %v650_v43 = vld [vmem:[#allocation12 + $0x30] sm:$0xff] }
  0xb4   :  { %1123 = vmatpush3.bf16.msra.mxu0 %v1122_v36  ;;  %v646_v36 = vld [vmem:[#allocation12 + $0x10] sm:$0xff]  ;;  %v649_v41 = vld [vmem:[#allocation12 + $0x28] sm:$0xff]  ;;  %v1202_v45 = vpack.c.bf16 %v651_v44, %v650_v43  ;;  %v652_v46 = vld [vmem:[#allocation12 + $0x40] sm:$0xff] }
  0xb5   :  { %1155 = vmatpush3.bf16.msra.mxu1 %v1154_v37  ;;  %1125 = vmatprep.subr.bf16.mxu0 %v1124_v38  ;;  %v1193_v37 = vpack.c.bf16 %v645_v35, %v644_v34  ;;  %v647_v38 = vld [vmem:[#allocation12 + $0x18] sm:$0xff]  ;;  %v653_v47 = vld [vmem:[#allocation12 + $0x48] sm:$0xff]  ;;  %v656_v52 = vld [vmem:[#allocation12 + $0x60] sm:$0xff] }
  0xb6   :  { %1157 = vmatprep.subr.bf16.mxu1 %v1156_v42  ;;  %v1196_v39 = vpack.c.bf16 %v647_v38, %v646_v36  ;;  %v1199_v42 = vpack.c.bf16 %v649_v41, %v648_v40  ;;  %v657_v53 = vld [vmem:[#allocation12 + $0x68] sm:$0xff]  ;;  %v658_v9 = vld [vmem:[#allocation12 + $0x70] sm:$0xff]  ;;  %v659_v10 = vld [vmem:[#allocation12 + $0x78] sm:$0xff] }
  0xb8   :  { %1127 = vmatpush3.bf16.msra.mxu0 %v1126_v48  ;;  %v1205_v48 = vpack.c.bf16 %v653_v47, %v652_v46 }
  0xb9   :  { %1159 = vmatpush3.bf16.msra.mxu1 %v1158_v49  ;;  %1129 = vmatprep.subr.bf16.mxu0 %v1128_v50  ;;  %v654_v49 = vld [vmem:[#allocation12 + $0x50] sm:$0xff]  ;;  %v655_v50 = vld [vmem:[#allocation12 + $0x58] sm:$0xff] }
  0xba   :  { %1161 = vmatprep.subr.bf16.mxu1 %v1160_v54  ;;  %v1208_v51 = vpack.c.bf16 %v655_v50, %v654_v49  ;;  %v1211_v54 = vpack.c.bf16 %v657_v53, %v656_v52 }
  0xbc   :  { %1131 = vmatpush3.bf16.msra.mxu0 %v1130_v60 }
  0xbd   :  { %1163 = vmatpush3.bf16.msra.mxu1 %v1162_v61  ;;  %1133 = vmatprep.subr.bf16.mxu0 %v1132_v62 }
  0xbe   :  { %1165 = vmatprep.subr.bf16.mxu1 %v1164_v1 }
  0xc0   :  { %1135 = vmatpush3.bf16.msra.mxu0 %v1134_v4 }
  0xc1   :  { %1167 = vmatpush3.bf16.msra.mxu1 %v1166_v5  ;;  %1168 = vmatprep.subr.bf16.mxu0 %v1436_v11  ;;  %v793_v5 = vld [vmem:[#allocation8] ss:$0 sm:$0xff] }
  0xc2   :  { %1192 = vmatprep.subr.bf16.mxu1 %v1436_v11 }
  0xc3   :  { %468 = vmatmul.mubr.f32.vlgmr.msra.gmra.mrb[2].mxu0 %v259_v6 }
  0xc4   :  { %538 = vmatmul.mubr.f32.vlgmr.msra.gmra.mrb[2].mxu1 %v261_v7  ;;  %1170 = vmatpush3.bf16.msra.mxu0 %v1169_v12  ;;  %v794_v12 = vld [vmem:[#allocation11] ss:$0 sm:$0xff] }
  0xc5   :  { %1171 = vmatprep.subr.bf16.mxu0 %v1436_v11  ;;  %1002 = vmatprep.mubr.msk.f32.mxu0 %vm1437_vm0, %v1438_v33 }
  0xc6   :  { %1037 = vmatprep.mubr.msk.f32.mxu1 %vm1437_vm0, %v1438_v33  ;;  %1194 = vmatpush3.bf16.msra.mxu1 %v1193_v37 }
  0xc7   :  { %1195 = vmatprep.subr.bf16.mxu1 %v1436_v11 }
  0xc8   :  { %1173 = vmatpush3.bf16.msra.mxu0 %v1172_v14 }
  0xc9   :  { %1174 = vmatprep.subr.bf16.mxu0 %v1436_v11 }
  0xca   :  { %1197 = vmatpush3.bf16.msra.mxu1 %v1196_v39 }
  0xcb   :  { %1198 = vmatprep.subr.bf16.mxu1 %v1436_v11 }
  0xcc   :  { %1176 = vmatpush3.bf16.msra.mxu0 %v1175_v17  ;;  %v795_v17 = vld [vmem:[#allocation14] ss:$0 sm:$0xff] }
  0xcd   :  { %1177 = vmatprep.subr.bf16.mxu0 %v1436_v11 }
  0xce   :  { %1200 = vmatpush3.bf16.msra.mxu1 %v1199_v42 }
  0xcf   :  { %1201 = vmatprep.subr.bf16.mxu1 %v1436_v11 }
  0xd0   :  { %1179 = vmatpush3.bf16.msra.mxu0 %v1178_v20 }
  0xd1   :  { %1180 = vmatprep.subr.bf16.mxu0 %v1436_v11 }
  0xd2   :  { %1203 = vmatpush3.bf16.msra.mxu1 %v1202_v45 }
  0xd3   :  { %1204 = vmatprep.subr.bf16.mxu1 %v1436_v11 }
  0xd4   :  { %1182 = vmatpush3.bf16.msra.mxu0 %v1181_v23 }
  0xd5   :  { %1183 = vmatprep.subr.bf16.mxu0 %v1436_v11 }
  0xd6   :  { %1206 = vmatpush3.bf16.msra.mxu1 %v1205_v48 }
  0xd7   :  { %1207 = vmatprep.subr.bf16.mxu1 %v1436_v11 }
  0xd8   :  { %1185 = vmatpush3.bf16.msra.mxu0 %v1184_v26 }
  0xd9   :  { %1186 = vmatprep.subr.bf16.mxu0 %v1436_v11 }
  0xda   :  { %1209 = vmatpush3.bf16.msra.mxu1 %v1208_v51 }
  0xdb   :  { %1210 = vmatprep.subr.bf16.mxu1 %v1436_v11 }
  0xdc   :  { %1188 = vmatpush3.bf16.msra.mxu0 %v1187_v29 }
  0xdd   :  { %1189 = vmatprep.subr.bf16.mxu0 %v1436_v11 }
  0xde   :  { %1212 = vmatpush3.bf16.msra.mxu1 %v1211_v54 }
  0xdf   :  { %1213 = vmatprep.subr.bf16.mxu1 %v1436_v11  ;;  %v1214_v11 = vpack.c.bf16 %v659_v10, %v658_v9 }
  0xe0   :  { %1191 = vmatpush3.bf16.msra.mxu0 %v1190_v32 }
  0xe2   :  { %1215 = vmatpush3.bf16.msra.mxu1 %v1214_v11 }
 0x176   :  { %v828_v55 = vpop.f32.mrb[0].mxu0 }
 0x177   :  { %v863_v56 = vpop.f32.mrb[0].mxu1  ;;  %v829_v57 = vpop.f32.mrb[1].mxu0 }
 0x178   :  { %v830_v58 = vadd.f32 %v829_v57, %v828_v55  ;;  %v864_v59 = vpop.f32.mrb[1].mxu1 }
 0x179   :  { %v865_v60 = vadd.f32 %v864_v59, %v863_v56 }
 0x17b   :  { %v400_v61 = vadd.f32 %v865_v60, %v830_v58 }
 0x196   :  { %v898_v62 = vpop.f32.mrb[2].mxu0 }
 0x197   :  { %v899_v63 = vpop.f32.mrb[3].mxu0  ;;  %v933_v0 = vpop.f32.mrb[2].mxu1 }
 0x198   :  { %v900_v1 = vadd.f32 %v899_v63, %v898_v62  ;;  %v934_v2 = vpop.f32.mrb[3].mxu1 }
 0x199   :  { %v935_v3 = vadd.f32 %v934_v2, %v933_v0 }
 0x19a   :  { %v470_v4 = vadd.f32 %v900_v1, %v400_v61 }
 0x19c   :  { %v540_v6 = vadd.f32 %v935_v3, %v470_v4 }
 0x19e   :  { %v543_v7 = vadd.f32 %v793_v5, %v540_v6 }
 0x1a0   :  { %v549_v8 = vmax.f32 %v543_v7, 0.0 }
 0x1a2   :  { %1003 = vmatmul.mubr.f32.vlgmr.msra.gmra.mrb[4].mxu0 %v549_v8 }
 0x275   :  { %v639_v13 = vpop.f32.mrb[4].mxu0 }
 0x276   :  { %v640_v14 = vadd.f32 %v794_v12, %v639_v13  ;;  %v1004_v15 = vpop.f32.mrb[5].mxu0 }
 0x278   :  { %v643_v16 = vmax.f32 %v640_v14, 0.0 }
 0x27a   :  { %1038 = vmatmul.mubr.f32.vlgmr.msra.gmra.mrb[4].mxu1 %v643_v16 }
 0x34d   :  { %v733_v18 = vpop.f32.mrb[4].mxu1 }
 0x34e   :  { %v734_v19 = vadd.f32 %v795_v17, %v733_v18  ;;  %v1039_v20 = vpop.f32.mrb[5].mxu1 }
 0x350   :  { %v737_v21 = vmul.f32 %v734_v19, %v734_v19 }
 0x352   :  { %738 = vadd.xlane.f32.xlu0 %v737_v21 }
 0x3df   :  { %v739_v22 = vpop.xlane.xlu0 %738 }
 0x3e0   :  { %1229 = vrsqrt.f32 %v739_v22  ;;  %vm742_vm1 = vcmp.eq.f32.partialorder %v739_v22, inf  ;;  %v745_v25 = vand.u32 2147483648, %v739_v22  ;;  %vm744_vm2 = vcmp.eq.f32.partialorder %v739_v22, 0.0 }
 0x3ea   :  { %v1230_v23 = vpop.eup %1229 }
 0x3eb   :  { %v741_v24 = vmul.f32 %v1230_v23, %v739_v22 }
 0x3ed   :  { %v743_v26 = vsel %vm742_vm1, %v739_v22, %v741_v24 }
 0x3ee   :  { %v746_v27 = vsel %vm744_vm2, %v745_v25, %v743_v26 }
 0x3ef   :  { %v747_v28 = vmax.f32 %v746_v27, 1e-12 }
 0x3f1   :  { %1231 = vrcp.f32 %v747_v28 }
 0x3fb   :  { %v1232_v29 = vpop.eup %1231 }
 0x3fc   :  { %v751_v30 = vmul.f32 %v1232_v29, %v746_v27  ;;  %v750_v35 = vmul.f32 %v1232_v29, %v734_v19 }
 0x3fe   :  { %v752_v31 = vmax.f32 %v751_v30, 1e-05 }
 0x400   :  { %v753_v32 = vmin.f32 %v752_v31, 15.0  ;;  %1233 = vrcp.f32 %v752_v31 }
 0x402   :  { %1235 = vtanh.f32 %v753_v32 }
 0x40a   :  { %v1234_v33 = vpop.eup %1233 }
 0x40c   :  { %v1236_v34 = vpop.eup %1235 }
 0x40d   :  { %v756_v36 = vmul.f32 %v1236_v34, %v1234_v33 }
 0x40f   :  { %v757_v37 = vmul.f32 %v756_v36, %v750_v35 }
 0x411   :  { %v758_v38 = vmul.f32 %v757_v37, %v757_v37 }
 0x413   :  { %759 = vadd.xlane.f32.xlu0 %v758_v38 }
 0x4a0   :  { %v760_v39 = vpop.xlane.xlu0 %759 }
 0x4a1   :  { %1237 = vrsqrt.f32 %v760_v39  ;;  %vm763_vm3 = vcmp.eq.f32.partialorder %v760_v39, inf  ;;  %v766_v42 = vand.u32 2147483648, %v760_v39  ;;  %vm765_vm4 = vcmp.eq.f32.partialorder %v760_v39, 0.0 }
 0x4ab   :  { %v1238_v40 = vpop.eup %1237 }
 0x4ac   :  { %v762_v41 = vmul.f32 %v1238_v40, %v760_v39 }
 0x4ae   :  { %v764_v43 = vsel %vm763_vm3, %v760_v39, %v762_v41 }
 0x4af   :  { %v767_v44 = vsel %vm765_vm4, %v766_v42, %v764_v43 }
 0x4b0   :  { %v768_v45 = vmax.f32 %v767_v44, 1e-05 }
 0x4b2   :  { %1239 = vrcp.f32 %v768_v45  ;;  %vm769_vm5 = vcmp.gt.f32.partialorder %v768_v45, 0.999 }
 0x4bc   :  { %v1240_v46 = vpop.eup %1239 }
 0x4bd   :  { %v771_v47 = vmul.f32 0.999, %v1240_v46 }
 0x4bf   :  { %v772_v48 = vsel %vm769_vm5, %v771_v47, 1.0 }
 0x4c0   :  { %v773_v49 = vmul.f32 %v772_v48, %v757_v37 }
 0x4c2   :  { %774 = vst [vmem:[#allocation15] sm:$0xff] %v773_v49 }
 0x4c3   :  { %1406 = shalt.err (!%p1403_p4)
}
 0x4c4   :  { %s1407_s15 = scalar_lea.hbm %s1608_s7, 128 }
 0x4c5   :  { %p1408_p5 = scmp.ne.s32.totalorder %s1608_s7, %s1407_s15  ;;  %p1411_p6 = scmp.lt.u32.totalorder %s1407_s15, %s1608_s7 }
 0x4c7   :  { %p1413_p7 = pnand %p1411_p6, %p1408_p5 }
 0x4c9   :  { %1416 = shalt.err (!%p1413_p7)
}
 0x4ca   :  { %784 = dma.vmem_to_hbm [thread:$0]  %s782_s13, 128, %s1608_s7, [#allocation5]  }
 0x4cb   :  { %1425 = dma.done.wait [#allocation5], 128  }
 0x4cc   :  { %1426 = vsyncadd [#allocation5], 4294967168 }
 0x4cd   :  { %788 = vsyncpa [#allocation4], 1 }
 0x4ce   :  { %789 = vsyncpa [#allocation7], 1 }
 0x4cf   :  { %790 = vsyncpa [#allocation10], 1 }
 0x4d0   :  { %791 = vsyncpa [#allocation13], 1 }
 0x4d1   :  { %792 = vsyncpa [#allocation5], 1 }

</bundles_post_ra>
